<compile_context>
chip_gen: v7x
topology: tpu7x:2x2x1
jax: 0.10.0
libtpu: 0.0.40
codegen_flags: <defaults>
</compile_context>

<pallas_src>
import math

import jax
import jax.numpy as jnp
from jax import lax
from jax.experimental import pallas as pl
from jax.experimental.pallas import tpu as pltpu


def _positional_encoding(seq_len, dim, dtype=jnp.float32):
    """Standard sinusoidal PE: pe[p, 2i] = sin(p*w_i), pe[p, 2i+1] = cos(p*w_i)."""
    pos = jnp.arange(seq_len, dtype=jnp.float32)[:, None]
    dim_i = jnp.arange(dim)
    inv_freq = jnp.exp(-(2.0 * (dim_i // 2).astype(jnp.float32) / dim) * math.log(10000.0))
    angle = pos * inv_freq
    pe = jnp.where(dim_i % 2 == 0, jnp.sin(angle), jnp.cos(angle))
    return pe.astype(dtype)


def _sublane_align(dtype):
    """Sublane packing: 8 rows for 32-bit, 16 for bf16, 32 for int8/fp8."""
    return max(8, 32 // jnp.dtype(dtype).itemsize)


def _choose_tile_s(S, align, target, cap_rows):
    """Largest sequence tile dividing S, aligned to `align`, <= min(target, cap_rows)."""
    limit = max(1, min(target, cap_rows))
    if S <= limit and (S % align == 0 or S < align):
        return S
    best = 0
    for t in range(align, min(S, limit) + 1, align):
        if S % t == 0:
            best = t
    if best:
        return best
    for t in range(min(S, limit), 0, -1):   # fallback: any divisor
        if S % t == 0:
            return t
    return S


def _make_kernel(S, TILE_S, D, T_pad, sqrt_dim, padding_index, apply_mask, unroll):
    def kernel(tok_ids_ref,                              # scalar prefetch (SMEM), (B*S,)
               tok_col_ref, tt_col_ref, pe_ref,          # blocked VMEM inputs
               type_tbl_ref, word_hbm,                   # VMEM-resident type tbl, HBM word tbl
               out_ref,                                  # (1, TILE_S, D) output tile
               wbuf, sems):                              # VMEM scratch + DMA semaphore
        s_blk = pl.program_id(0)
        b = pl.program_id(1)
        base = b * S + s_blk * TILE_S                    # flat row offset of this tile

        # ---- issue word row-gather DMAs (HBM -> VMEM), `unroll` rows per trip ----
        @pl.loop(0, TILE_S // unroll)
        def _(t):
            r0 = pl.multiple_of(t * unroll, unroll)
            for u in range(unroll):                      # static unroll: co-issue starts
                r = r0 + u
                tok = tok_ids_ref[base + r]
                pltpu.make_async_copy(word_hbm.at[pl.ds(tok, 1)],
                                      wbuf.at[pl.ds(r, 1)],
                                      sems.at[0]).start()

        # ---- overlap gather latency: type one-hot matmul (MXU) + PE add (VPU) ----
        tt = tt_col_ref[...]                                                   # (TILE_S, 1) i32
        onehot = (tt == lax.broadcasted_iota(jnp.int32, (TILE_S, T_pad), 1)
                  ).astype(jnp.float32)                                        # (TILE_S, T_pad)
        type_emb = jnp.dot(onehot, type_tbl_ref[...].astype(jnp.float32),
                           preferred_element_type=jnp.float32)                 # (TILE_S, D)
        partial = type_emb * sqrt_dim + pe_ref[...]

        # ---- single collapsed wait: DMA semaphores count bytes, so one
        #      full-buffer-sized descriptor drains all TILE_S single-row copies ----
        pltpu.make_async_copy(wbuf, wbuf, sems.at[0]).wait()

        emb = wbuf[...].astype(jnp.float32) * sqrt_dim + partial
        if apply_mask:
            emb = jnp.where(tok_col_ref[...] != padding_index, emb, 0.0)
        out_ref[0, :, :] = emb.astype(out_ref.dtype)

    return kernel


def triple_embedding_block(tokens, token_types, word_table, type_table,
                           padding_index=None, out_dtype=None,
                           tile_s_target=512, vmem_budget_bytes=24 * 1024 * 1024):
    B, S = tokens.shape
    V, D = word_table.shape
    T, _ = type_table.shape
    sqrt_dim = float(D) ** 0.5
    out_dtype = out_dtype if out_dtype is not None else word_table.dtype

    tbl_bytes = jnp.dtype(word_table.dtype).itemsize
    out_bytes = jnp.dtype(out_dtype).itemsize

    # VMEM-budget-derived sequence tile (wbuf + double-buffered PE/out + id columns).
    per_row = D * (tbl_bytes + 2 * 4 + 2 * out_bytes) + 4 * 128 * 4
    cap_rows = max(8, vmem_budget_bytes // max(per_row, 1))
    align = max(_sublane_align(word_table.dtype), _sublane_align(out_dtype))
    TILE_S = _choose_tile_s(S, align, tile_s_target, cap_rows)
    num_s_tiles = S // TILE_S
    unroll = 8 if TILE_S % 8 == 0 else 1

    # Mirrors the PyTorch `if self.padding_index:` truthiness (0 / None disables masking).
    apply_mask = bool(padding_index)

    # Tiny type table: pad rows to a sublane multiple, keep it VMEM-resident.
    T_pad = max(8, -(-T // 8) * 8)
    type_tbl = jnp.zeros((T_pad, D), type_table.dtype).at[:T, :].set(type_table)

    tok_flat = tokens.reshape(-1).astype(jnp.int32)      # SMEM ids driving word gathers
    tok_col = tok_flat.reshape(B * S, 1)                 # vectorized padding mask
    tt_col = token_types.reshape(B * S, 1).astype(jnp.int32)  # one-hot type lookup
    pe = _positional_encoding(S, D, jnp.float32)         # hoisted out of the grid loop

    kernel = _make_kernel(S, TILE_S, D, T_pad, sqrt_dim, padding_index, apply_mask, unroll)

    grid_spec = pltpu.PrefetchScalarGridSpec(
        num_scalar_prefetch=1,                           # token ids -> SMEM
        grid=(num_s_tiles, B),                           # batch innermost: PE block reused
        in_specs=[
            pl.BlockSpec((TILE_S, 1), lambda s, b, tok: (b * num_s_tiles + s, 0)),  # tok col
            pl.BlockSpec((TILE_S, 1), lambda s, b, tok: (b * num_s_tiles + s, 0)),  # type col
            pl.BlockSpec((TILE_S, D), lambda s, b, tok: (s, 0)),                    # PE tile
            pl.BlockSpec((T_pad, D), lambda s, b, tok: (0, 0)),                     # type table
            pl.BlockSpec(memory_space=pl.ANY),                                      # word table (HBM)
        ],
        out_specs=pl.BlockSpec((1, TILE_S, D), lambda s, b, tok: (b, s, 0)),
        scratch_shapes=[
            pltpu.VMEM((TILE_S, D), word_table.dtype),   # gathered word rows
            pltpu.SemaphoreType.DMA((1,)),               # one byte-counting gather semaphore
        ],
    )

    footprint = (TILE_S * D * tbl_bytes + 2 * T_pad * D * tbl_bytes
                 + 2 * TILE_S * D * 4 + 2 * TILE_S * D * out_bytes
                 + 4 * TILE_S * 128 * 4)
    vmem_limit = int(min(48 * 1024 * 1024, max(16 * 1024 * 1024, 2 * footprint)))

    cost = pl.CostEstimate(
        flops=2 * B * S * T_pad * D + 4 * B * S * D,
        transcendentals=0,
        bytes_accessed=B * S * D * (tbl_bytes + out_bytes) + S * D * 4 + 2 * B * S * 4,
    )

    return pl.pallas_call(
        kernel,
        out_shape=jax.ShapeDtypeStruct((B, S, D), out_dtype),
        grid_spec=grid_spec,
        compiler_params=pltpu.CompilerParams(
            dimension_semantics=("parallel", "parallel"),
            vmem_limit_bytes=vmem_limit,
        ),
        cost_estimate=cost,
    )(tok_flat, tok_col, tt_col, pe, type_tbl, word_table)


def _reference(tokens, token_types, word_table, type_table, padding_index):
    """Pure-JAX reference mirroring the PyTorch forward."""
    B, S = tokens.shape
    V, D = word_table.shape
    sqrt_dim = float(D) ** 0.5
    we = word_table[tokens] * sqrt_dim
    te = type_table[token_types] * sqrt_dim
    pe = _positional_encoding(S, D, jnp.float32)
    out = we + pe + te
    if padding_index:
        out = out * (tokens != padding_index)[..., None].astype(jnp.float32)
    return out


if __name__ == "__main__":
    # Small, deterministic configuration.
    B, S = 2, 8            # batch, sequence length
    V, T, D = 32, 4, 32    # vocab size, num type embeddings, embedding dim
    PADDING_INDEX = 1

    key = jax.random.PRNGKey(0)
    k_word, k_type, k_tok, k_tt = jax.random.split(key, 4)

    # Parameters (nn.Embedding default init ~ N(0,1)); padding_idx row zeroed
    # to match nn.Embedding(padding_idx=...).
    word_table = jax.random.normal(k_word, (V, D), dtype=jnp.float32)
    word_table = word_table.at[PADDING_INDEX].set(0.0)
    type_table = jax.random.normal(k_type, (T, D), dtype=jnp.float32)

    tokens = jax.random.randint(k_tok, (B, S), 0, V, dtype=jnp.int32)
    tokens = tokens.at[0, -2:].set(PADDING_INDEX)   # exercise the padding mask
    token_types = jax.random.randint(k_tt, (B, S), 0, T, dtype=jnp.int32)

    out = triple_embedding_block(tokens, token_types, word_table, type_table,
                                 padding_index=PADDING_INDEX)
    out = jax.block_until_ready(out)

    ref = _reference(tokens, token_types, word_table, type_table, PADDING_INDEX)
    assert out.shape == (B, S, D)
    assert jnp.allclose(out, ref, rtol=1e-5, atol=1e-5), "mismatch vs reference"

    print("KERNEL_OK")
</pallas_src>

<mosaic_0001>
module attributes {stable_mosaic.version = 11 : i64} {
  func.func @kernel(%arg0: i32, %arg1: i32, %arg2: memref<16xi32, #tpu.memory_space<smem>>, %arg3: memref<8x1xi32, #tpu.memory_space<vmem>>, %arg4: memref<8x1xi32, #tpu.memory_space<vmem>>, %arg5: memref<8x32xf32, #tpu.memory_space<vmem>>, %arg6: memref<8x32xf32, #tpu.memory_space<vmem>>, %arg7: memref<32x32xf32, #tpu.memory_space<any>>, %arg8: memref<1x8x32xf32, #tpu.memory_space<vmem>>, %arg9: memref<8x32xf32, #tpu.memory_space<vmem>>, %arg10: memref<1x!tpu.dma_semaphore, #tpu.memory_space<semaphore_mem>>) attributes {dimension_semantics = [#tpu.dimension_semantics<parallel>, #tpu.dimension_semantics<parallel>], iteration_bounds = array<i64: 1, 2>, scalar_prefetch = 1 : i64, scratch_operands = 2 : i64, tpu.core_type = #tpu.core_type<tc>, window_params = [{transform_indices = @transform_0, window_bounds = array<i64: 8, 1>}, {transform_indices = @transform_1, window_bounds = array<i64: 8, 1>}, {transform_indices = @transform_2, window_bounds = array<i64: 8, 32>}, {pipeline_mode = #tpu.pipeline_mode<synchronous>, transform_indices = @transform_3, window_bounds = array<i64: 8, 32>}, {}, {transform_indices = @transform_5, window_bounds = array<i64: 1, 8, 32>}]} {
    %c8_i32 = arith.constant 8 : i32
    %0 = arith.muli %arg1, %c8_i32 : i32
    %c8_i32_0 = arith.constant 8 : i32
    %1 = arith.muli %arg0, %c8_i32_0 : i32
    %2 = arith.addi %0, %1 : i32
    %c0_i32 = arith.constant 0 : i32
    %c1_i32 = arith.constant 1 : i32
    %3 = arith.muli %c0_i32, %c1_i32 : i32
    %c0_i32_1 = arith.constant 0 : i32
    %4 = arith.addi %c0_i32_1, %3 : i32
    %c8_i32_2 = arith.constant 8 : i32
    %5 = arith.muli %4, %c8_i32_2 : i32
    %6 = tpu.assume_multiple %5, 8 : i32
    %c0_i32_3 = arith.constant 0 : i32
    %7 = arith.addi %6, %c0_i32_3 : i32
    %8 = arith.addi %2, %7 : i32
    %9 = arith.index_cast %8 : i32 to index
    %10 = memref.load %arg2[%9] : memref<16xi32, #tpu.memory_space<smem>>
    %c0_i32_4 = arith.constant 0 : i32
    %c0_i32_5 = arith.constant 0 : i32
    %11 = tpu.memref_slice %arg7[%10, %c0_i32_5] : memref<32x32xf32, #tpu.memory_space<any>> -> memref<1x32xf32, #tpu.memory_space<any>>
    %c0_i32_6 = arith.constant 0 : i32
    %12 = tpu.memref_slice %arg9[%7, %c0_i32_6] : memref<8x32xf32, #tpu.memory_space<vmem>> -> memref<1x32xf32, #tpu.memory_space<vmem>>
    %13 = tpu.memref_slice %arg10[%c0_i32_4] : memref<1x!tpu.dma_semaphore, #tpu.memory_space<semaphore_mem>> -> memref<1x!tpu.dma_semaphore, #tpu.memory_space<semaphore_mem>>
    %14 = tpu.memref_squeeze %13 : memref<1x!tpu.dma_semaphore, #tpu.memory_space<semaphore_mem>> -> memref<!tpu.dma_semaphore, #tpu.memory_space<semaphore_mem>>
    tpu.enqueue_dma source(%11 : memref<1x32xf32, #tpu.memory_space<any>>) target(%12 : memref<1x32xf32, #tpu.memory_space<vmem>>) target_semaphore(%14 : memref<!tpu.dma_semaphore, #tpu.memory_space<semaphore_mem>>)
    %c1_i32_7 = arith.constant 1 : i32
    %15 = arith.addi %6, %c1_i32_7 : i32
    %16 = arith.addi %2, %15 : i32
    %17 = arith.index_cast %16 : i32 to index
    %18 = memref.load %arg2[%17] : memref<16xi32, #tpu.memory_space<smem>>
    %c0_i32_8 = arith.constant 0 : i32
    %c0_i32_9 = arith.constant 0 : i32
    %19 = tpu.memref_slice %arg7[%18, %c0_i32_9] : memref<32x32xf32, #tpu.memory_space<any>> -> memref<1x32xf32, #tpu.memory_space<any>>
    %c0_i32_10 = arith.constant 0 : i32
    %20 = tpu.memref_slice %arg9[%15, %c0_i32_10] : memref<8x32xf32, #tpu.memory_space<vmem>> -> memref<1x32xf32, #tpu.memory_space<vmem>>
    %21 = tpu.memref_slice %arg10[%c0_i32_8] : memref<1x!tpu.dma_semaphore, #tpu.memory_space<semaphore_mem>> -> memref<1x!tpu.dma_semaphore, #tpu.memory_space<semaphore_mem>>
    %22 = tpu.memref_squeeze %21 : memref<1x!tpu.dma_semaphore, #tpu.memory_space<semaphore_mem>> -> memref<!tpu.dma_semaphore, #tpu.memory_space<semaphore_mem>>
    tpu.enqueue_dma source(%19 : memref<1x32xf32, #tpu.memory_space<any>>) target(%20 : memref<1x32xf32, #tpu.memory_space<vmem>>) target_semaphore(%22 : memref<!tpu.dma_semaphore, #tpu.memory_space<semaphore_mem>>)
    %c2_i32 = arith.constant 2 : i32
    %23 = arith.addi %6, %c2_i32 : i32
    %24 = arith.addi %2, %23 : i32
    %25 = arith.index_cast %24 : i32 to index
    %26 = memref.load %arg2[%25] : memref<16xi32, #tpu.memory_space<smem>>
    %c0_i32_11 = arith.constant 0 : i32
    %c0_i32_12 = arith.constant 0 : i32
    %27 = tpu.memref_slice %arg7[%26, %c0_i32_12] : memref<32x32xf32, #tpu.memory_space<any>> -> memref<1x32xf32, #tpu.memory_space<any>>
    %c0_i32_13 = arith.constant 0 : i32
    %28 = tpu.memref_slice %arg9[%23, %c0_i32_13] : memref<8x32xf32, #tpu.memory_space<vmem>> -> memref<1x32xf32, #tpu.memory_space<vmem>>
    %29 = tpu.memref_slice %arg10[%c0_i32_11] : memref<1x!tpu.dma_semaphore, #tpu.memory_space<semaphore_mem>> -> memref<1x!tpu.dma_semaphore, #tpu.memory_space<semaphore_mem>>
    %30 = tpu.memref_squeeze %29 : memref<1x!tpu.dma_semaphore, #tpu.memory_space<semaphore_mem>> -> memref<!tpu.dma_semaphore, #tpu.memory_space<semaphore_mem>>
    tpu.enqueue_dma source(%27 : memref<1x32xf32, #tpu.memory_space<any>>) target(%28 : memref<1x32xf32, #tpu.memory_space<vmem>>) target_semaphore(%30 : memref<!tpu.dma_semaphore, #tpu.memory_space<semaphore_mem>>)
    %c3_i32 = arith.constant 3 : i32
    %31 = arith.addi %6, %c3_i32 : i32
    %32 = arith.addi %2, %31 : i32
    %33 = arith.index_cast %32 : i32 to index
    %34 = memref.load %arg2[%33] : memref<16xi32, #tpu.memory_space<smem>>
    %c0_i32_14 = arith.constant 0 : i32
    %c0_i32_15 = arith.constant 0 : i32
    %35 = tpu.memref_slice %arg7[%34, %c0_i32_15] : memref<32x32xf32, #tpu.memory_space<any>> -> memref<1x32xf32, #tpu.memory_space<any>>
    %c0_i32_16 = arith.constant 0 : i32
    %36 = tpu.memref_slice %arg9[%31, %c0_i32_16] : memref<8x32xf32, #tpu.memory_space<vmem>> -> memref<1x32xf32, #tpu.memory_space<vmem>>
    %37 = tpu.memref_slice %arg10[%c0_i32_14] : memref<1x!tpu.dma_semaphore, #tpu.memory_space<semaphore_mem>> -> memref<1x!tpu.dma_semaphore, #tpu.memory_space<semaphore_mem>>
    %38 = tpu.memref_squeeze %37 : memref<1x!tpu.dma_semaphore, #tpu.memory_space<semaphore_mem>> -> memref<!tpu.dma_semaphore, #tpu.memory_space<semaphore_mem>>
    tpu.enqueue_dma source(%35 : memref<1x32xf32, #tpu.memory_space<any>>) target(%36 : memref<1x32xf32, #tpu.memory_space<vmem>>) target_semaphore(%38 : memref<!tpu.dma_semaphore, #tpu.memory_space<semaphore_mem>>)
    %c4_i32 = arith.constant 4 : i32
    %39 = arith.addi %6, %c4_i32 : i32
    %40 = arith.addi %2, %39 : i32
    %41 = arith.index_cast %40 : i32 to index
    %42 = memref.load %arg2[%41] : memref<16xi32, #tpu.memory_space<smem>>
    %c0_i32_17 = arith.constant 0 : i32
    %c0_i32_18 = arith.constant 0 : i32
    %43 = tpu.memref_slice %arg7[%42, %c0_i32_18] : memref<32x32xf32, #tpu.memory_space<any>> -> memref<1x32xf32, #tpu.memory_space<any>>
    %c0_i32_19 = arith.constant 0 : i32
    %44 = tpu.memref_slice %arg9[%39, %c0_i32_19] : memref<8x32xf32, #tpu.memory_space<vmem>> -> memref<1x32xf32, #tpu.memory_space<vmem>>
    %45 = tpu.memref_slice %arg10[%c0_i32_17] : memref<1x!tpu.dma_semaphore, #tpu.memory_space<semaphore_mem>> -> memref<1x!tpu.dma_semaphore, #tpu.memory_space<semaphore_mem>>
    %46 = tpu.memref_squeeze %45 : memref<1x!tpu.dma_semaphore, #tpu.memory_space<semaphore_mem>> -> memref<!tpu.dma_semaphore, #tpu.memory_space<semaphore_mem>>
    tpu.enqueue_dma source(%43 : memref<1x32xf32, #tpu.memory_space<any>>) target(%44 : memref<1x32xf32, #tpu.memory_space<vmem>>) target_semaphore(%46 : memref<!tpu.dma_semaphore, #tpu.memory_space<semaphore_mem>>)
    %c5_i32 = arith.constant 5 : i32
    %47 = arith.addi %6, %c5_i32 : i32
    %48 = arith.addi %2, %47 : i32
    %49 = arith.index_cast %48 : i32 to index
    %50 = memref.load %arg2[%49] : memref<16xi32, #tpu.memory_space<smem>>
    %c0_i32_20 = arith.constant 0 : i32
    %c0_i32_21 = arith.constant 0 : i32
    %51 = tpu.memref_slice %arg7[%50, %c0_i32_21] : memref<32x32xf32, #tpu.memory_space<any>> -> memref<1x32xf32, #tpu.memory_space<any>>
    %c0_i32_22 = arith.constant 0 : i32
    %52 = tpu.memref_slice %arg9[%47, %c0_i32_22] : memref<8x32xf32, #tpu.memory_space<vmem>> -> memref<1x32xf32, #tpu.memory_space<vmem>>
    %53 = tpu.memref_slice %arg10[%c0_i32_20] : memref<1x!tpu.dma_semaphore, #tpu.memory_space<semaphore_mem>> -> memref<1x!tpu.dma_semaphore, #tpu.memory_space<semaphore_mem>>
    %54 = tpu.memref_squeeze %53 : memref<1x!tpu.dma_semaphore, #tpu.memory_space<semaphore_mem>> -> memref<!tpu.dma_semaphore, #tpu.memory_space<semaphore_mem>>
    tpu.enqueue_dma source(%51 : memref<1x32xf32, #tpu.memory_space<any>>) target(%52 : memref<1x32xf32, #tpu.memory_space<vmem>>) target_semaphore(%54 : memref<!tpu.dma_semaphore, #tpu.memory_space<semaphore_mem>>)
    %c6_i32 = arith.constant 6 : i32
    %55 = arith.addi %6, %c6_i32 : i32
    %56 = arith.addi %2, %55 : i32
    %57 = arith.index_cast %56 : i32 to index
    %58 = memref.load %arg2[%57] : memref<16xi32, #tpu.memory_space<smem>>
    %c0_i32_23 = arith.constant 0 : i32
    %c0_i32_24 = arith.constant 0 : i32
    %59 = tpu.memref_slice %arg7[%58, %c0_i32_24] : memref<32x32xf32, #tpu.memory_space<any>> -> memref<1x32xf32, #tpu.memory_space<any>>
    %c0_i32_25 = arith.constant 0 : i32
    %60 = tpu.memref_slice %arg9[%55, %c0_i32_25] : memref<8x32xf32, #tpu.memory_space<vmem>> -> memref<1x32xf32, #tpu.memory_space<vmem>>
    %61 = tpu.memref_slice %arg10[%c0_i32_23] : memref<1x!tpu.dma_semaphore, #tpu.memory_space<semaphore_mem>> -> memref<1x!tpu.dma_semaphore, #tpu.memory_space<semaphore_mem>>
    %62 = tpu.memref_squeeze %61 : memref<1x!tpu.dma_semaphore, #tpu.memory_space<semaphore_mem>> -> memref<!tpu.dma_semaphore, #tpu.memory_space<semaphore_mem>>
    tpu.enqueue_dma source(%59 : memref<1x32xf32, #tpu.memory_space<any>>) target(%60 : memref<1x32xf32, #tpu.memory_space<vmem>>) target_semaphore(%62 : memref<!tpu.dma_semaphore, #tpu.memory_space<semaphore_mem>>)
    %c7_i32 = arith.constant 7 : i32
    %63 = arith.addi %6, %c7_i32 : i32
    %64 = arith.addi %2, %63 : i32
    %65 = arith.index_cast %64 : i32 to index
    %66 = memref.load %arg2[%65] : memref<16xi32, #tpu.memory_space<smem>>
    %c0_i32_26 = arith.constant 0 : i32
    %c0_i32_27 = arith.constant 0 : i32
    %67 = tpu.memref_slice %arg7[%66, %c0_i32_27] : memref<32x32xf32, #tpu.memory_space<any>> -> memref<1x32xf32, #tpu.memory_space<any>>
    %c0_i32_28 = arith.constant 0 : i32
    %68 = tpu.memref_slice %arg9[%63, %c0_i32_28] : memref<8x32xf32, #tpu.memory_space<vmem>> -> memref<1x32xf32, #tpu.memory_space<vmem>>
    %69 = tpu.memref_slice %arg10[%c0_i32_26] : memref<1x!tpu.dma_semaphore, #tpu.memory_space<semaphore_mem>> -> memref<1x!tpu.dma_semaphore, #tpu.memory_space<semaphore_mem>>
    %70 = tpu.memref_squeeze %69 : memref<1x!tpu.dma_semaphore, #tpu.memory_space<semaphore_mem>> -> memref<!tpu.dma_semaphore, #tpu.memory_space<semaphore_mem>>
    tpu.enqueue_dma source(%67 : memref<1x32xf32, #tpu.memory_space<any>>) target(%68 : memref<1x32xf32, #tpu.memory_space<vmem>>) target_semaphore(%70 : memref<!tpu.dma_semaphore, #tpu.memory_space<semaphore_mem>>)
    %c1_i32_29 = arith.constant 1 : i32
    %c0 = arith.constant 0 : index
    %c0_30 = arith.constant 0 : index
    %71 = vector.load %arg4[%c0, %c0_30] : memref<8x1xi32, #tpu.memory_space<vmem>>, vector<8x1xi32>
    %72 = tpu.iota {dimensions = array<i32: 1>} : vector<8x8xi32>
    %73 = vector.broadcast %71 : vector<8x1xi32> to vector<8x8xi32>
    %74 = arith.cmpi eq, %73, %72 : vector<8x8xi32>
    %75 = arith.extui %74 : vector<8x8xi1> to vector<8x8xi32>
    %76 = arith.sitofp %75 : vector<8x8xi32> to vector<8x8xf32>
    %c0_31 = arith.constant 0 : index
    %c0_32 = arith.constant 0 : index
    %77 = vector.load %arg6[%c0_31, %c0_32] : memref<8x32xf32, #tpu.memory_space<vmem>>, vector<8x32xf32>
    %cst = arith.constant dense<0.000000e+00> : vector<8x32xf32>
    %78 = tpu.matmul %76, %77, %cst {dimension_numbers = #tpu.dot_dimension_numbers<[1], [0], [0], [1], [0, 0, 1, 1], [], []>} : vector<8x8xf32>, vector<8x32xf32>, vector<8x32xf32> -> vector<8x32xf32>
    %cst_33 = arith.constant 5.65685415 : f32
    %79 = vector.broadcast %cst_33 : f32 to vector<8x32xf32>
    %80 = arith.mulf %78, %79 : vector<8x32xf32>
    %c0_34 = arith.constant 0 : index
    %c0_35 = arith.constant 0 : index
    %81 = vector.load %arg5[%c0_34, %c0_35] : memref<8x32xf32, #tpu.memory_space<vmem>>, vector<8x32xf32>
    %82 = arith.addf %80, %81 : vector<8x32xf32>
    %c0_i32_36 = arith.constant 0 : i32
    %83 = tpu.memref_slice %arg10[%c0_i32_36] : memref<1x!tpu.dma_semaphore, #tpu.memory_space<semaphore_mem>> -> memref<1x!tpu.dma_semaphore, #tpu.memory_space<semaphore_mem>>
    %84 = tpu.memref_squeeze %83 : memref<1x!tpu.dma_semaphore, #tpu.memory_space<semaphore_mem>> -> memref<!tpu.dma_semaphore, #tpu.memory_space<semaphore_mem>>
    tpu.wait_dma2 semaphore(%84 : memref<!tpu.dma_semaphore, #tpu.memory_space<semaphore_mem>>) src(%arg9 : memref<8x32xf32, #tpu.memory_space<vmem>>) dst(%arg9 : memref<8x32xf32, #tpu.memory_space<vmem>>)
    %c0_37 = arith.constant 0 : index
    %c0_38 = arith.constant 0 : index
    %85 = vector.load %arg9[%c0_37, %c0_38] : memref<8x32xf32, #tpu.memory_space<vmem>>, vector<8x32xf32>
    %cst_39 = arith.constant 5.65685415 : f32
    %86 = vector.broadcast %cst_39 : f32 to vector<8x32xf32>
    %87 = arith.mulf %85, %86 : vector<8x32xf32>
    %88 = arith.addf %87, %82 : vector<8x32xf32>
    %c0_40 = arith.constant 0 : index
    %c0_41 = arith.constant 0 : index
    %89 = vector.load %arg3[%c0_40, %c0_41] : memref<8x1xi32, #tpu.memory_space<vmem>>, vector<8x1xi32>
    %c1_i32_42 = arith.constant 1 : i32
    %90 = vector.broadcast %c1_i32_42 : i32 to vector<8x1xi32>
    %91 = arith.cmpi ne, %89, %90 : vector<8x1xi32>
    %cst_43 = arith.constant 0.000000e+00 : f32
    %92 = vector.shape_cast %91 : vector<8x1xi1> to vector<8x1xi1>
    %93 = vector.broadcast %92 : vector<8x1xi1> to vector<8x32xi1>
    %94 = vector.broadcast %cst_43 : f32 to vector<8x32xf32>
    %95 = arith.select %93, %88, %94 : vector<8x32xi1>, vector<8x32xf32>
    %c0_44 = arith.constant 0 : index
    %c0_45 = arith.constant 0 : index
    %c0_46 = arith.constant 0 : index
    %96 = vector.load %arg8[%c0_44, %c0_45, %c0_46] : memref<1x8x32xf32, #tpu.memory_space<vmem>>, vector<1x8x32xf32>
    %97 = vector.shape_cast %96 : vector<1x8x32xf32> to vector<8x32xf32>
    %98 = vector.shape_cast %95 : vector<8x32xf32> to vector<1x8x32xf32>
    tpu.vector_store %arg8[%c0_44, %c0_45, %c0_46], %98 {strides = array<i32>} : memref<1x8x32xf32, #tpu.memory_space<vmem>>, vector<1x8x32xf32>,
    return
  }
  func.func @transform_0(%arg0: i32, %arg1: i32, %arg2: memref<16xi32, #tpu.memory_space<smem>>) -> (i32, i32) {
    %c1_i32 = arith.constant 1 : i32
    %0 = arith.muli %arg1, %c1_i32 : i32
    %1 = arith.addi %0, %arg0 : i32
    %c0_i32 = arith.constant 0 : i32
    %c0_i32_0 = arith.constant 0 : i32
    return %1, %c0_i32 : i32, i32
  }
  func.func @transform_1(%arg0: i32, %arg1: i32, %arg2: memref<16xi32, #tpu.memory_space<smem>>) -> (i32, i32) {
    %c1_i32 = arith.constant 1 : i32
    %0 = arith.muli %arg1, %c1_i32 : i32
    %1 = arith.addi %0, %arg0 : i32
    %c0_i32 = arith.constant 0 : i32
    %c0_i32_0 = arith.constant 0 : i32
    return %1, %c0_i32 : i32, i32
  }
  func.func @transform_2(%arg0: i32, %arg1: i32, %arg2: memref<16xi32, #tpu.memory_space<smem>>) -> (i32, i32) {
    %c0_i32 = arith.constant 0 : i32
    %c0_i32_0 = arith.constant 0 : i32
    return %arg0, %c0_i32 : i32, i32
  }
  func.func @transform_3(%arg0: i32, %arg1: i32, %arg2: memref<16xi32, #tpu.memory_space<smem>>) -> (i32, i32) {
    %c0_i32 = arith.constant 0 : i32
    %c0_i32_0 = arith.constant 0 : i32
    %c0_i32_1 = arith.constant 0 : i32
    return %c0_i32, %c0_i32_0 : i32, i32
  }
  func.func @transform_5(%arg0: i32, %arg1: i32, %arg2: memref<16xi32, #tpu.memory_space<smem>>) -> (i32, i32, i32) {
    %c0_i32 = arith.constant 0 : i32
    %c0_i32_0 = arith.constant 0 : i32
    return %arg1, %arg0, %c0_i32 : i32, i32, i32
  }
}

</mosaic_0001>

<bundles_post_ra>
// kernel: tpu_custom_call.1
= control target key start
LH: loop header
LB: loop body
LE: loop exit
PB: predicated region body
PF: predicated region fallthrough
CT: control target
= control target key end

     0   :  { %s1374_s0 = inlined_call_operand.vmem [shape: s32[16], index: 0, kind: input, shape index: {}]   ;;  %s1375_s1 = inlined_call_operand.vmem [shape: s32[16,1], index: 1, kind: input, shape index: {}]   ;;  %s1376_s2 = inlined_call_operand.vmem [shape: s32[16,1], index: 2, kind: input, shape index: {}]   ;;  %s1377_s3 = inlined_call_operand.vmem [shape: f32[8,32], index: 3, kind: input, shape index: {}]   ;;  %s1378_s4 = inlined_call_operand.vmem [shape: f32[8,32], index: 4, kind: input, shape index: {}]   ;;  %s1379_s5 = inlined_call_operand.vmem [shape: f32[32,32], index: 5, kind: input, shape index: {}]   ;;  %s1380_s6 = inlined_call_operand.hbm [shape: f32[2,8,32], index: 6, kind: output, shape index: {}]  }
   0x1   :  { %s11_s23 = sshll.u32 %s1374_s0, 4  ;;  %s12_s23 = int_to_ptr.vmem [resolvable:$true] %s11_s23 }
   0x2   :  { %s1062_s24 = scalar_lea.vmem %s12_s23, 16  ;;  %p1067_p1 = scmp.lt.s32.totalorder %s12_s23, %s12_s23 }
   0x3   :  { %p1063_p0 = scmp.ne.s32.totalorder %s12_s23, %s1062_s24  ;;  %p1068_p2 = scmp.lt.s32.totalorder %s1062_s24, %s1062_s24 }
   0x5   :  { %p1069_p3 = por %p1068_p2, %p1067_p1 }
   0x7   :  { %p1070_p4 = pnand %p1069_p3, %p1063_p0 }
   0x9   :  { %1073 = shalt.err (!%p1070_p4)  }
   0xa   :  { %s1158_s25 = smov [#allocation5]  }
   0xb   :  { %14 = dma.vmem_to_smem %s12_s23, 16, %s1158_s25, [#allocation4] }
   0xc   :  { %1126 = dma.done.wait [#allocation4], 16 }
   0xd   :  { %1127 = vsyncadd [#allocation4], 4294967280 }
   0xe   :  { %16 = sfence }
   0xf   :  { %17 = vsyncpa [#allocation7], 0 }
  0x10   :  { %19 = vsyncpa [#allocation7 + $0x1], 0  ;;  %s1201_s26 = smov 0   ;;  %s1203_s27 = smov 0  }
  0x11   :  { %s1205_s0 = smov 0   ;;  %s1207_s28 = smov 0  }
  0x12   :  { %s1209_s29 = smov 0   ;;  %s1211_s30 = smov 0  }
  0x13 LB: > { %1384 = sst [smem:[#allocation19_spill]] %s1152_s29  ;;  %s977_s7 = sadd.s32 4294967295, %s1156_s30   ;;  %s1156_s30 = sphi %s1211_s30, %s25_s30   ;;  %s1152_s29 = sphi %s1209_s29, %s1392_s29   ;;  %s1148_s28 = sphi %s1207_s28, %s1391_s28   ;;  %s1144_s0 = sphi %s1205_s0, %s1395_s0   ;;  %s1140_s27 = sphi %s1203_s27, %s1394_s27   ;;  %s1136_s26 = sphi %s1201_s26, %s1393_s26  }
  0x14   : > { %s978_s8 = sadd.s32 4294967294, %s1156_s30   ;;  %s34_s9 = sadd.s32 1, %s1152_s29 }
  0x15   : > { %s149_s10 = sadd.s32 1, %s1144_s0  ;;  %p35_p5 = scmp.ge.s32.totalorder %s34_s9, 2 }
  0x16   : > { %p159_p6 = scmp.ne.s32.totalorder %s1144_s0, %s1140_s27  ;;  %p160_p7 = scmp.eq.s32.totalorder %s977_s7, 1 }
  0x17   : > { %p165_p8 = scmp.ne.s32.totalorder %s1140_s27, %s1136_s26  ;;  %s1397_s9 = smov (%p35_p5, %s34_s9), 0 }
  0x18   : > { %1385 = sst [smem:[#allocation20_spill]] %s1397_s9  ;;  %p1241_p9 = por %p160_p7, %p159_p6 }
  0x19   : > { %p166_p10 = scmp.eq.s32.totalorder %s978_s8, 1  ;;  %s144_s12 = ssub.s32 %s1152_s29, %s1397_s9 }
  0x1a   : > { %p982_p11 = scmp.ge.s32.totalorder %s1156_s30, 1  ;;  %p147_p12 = scmp.eq.s32.totalorder %s144_s12, 0 }
  0x1b   : > { %p1248_p13 = por %p166_p10, %p165_p8  ;;  %p212_p0 = scmp.lt.s32.totalorder %s1156_s30, 3 }
  0x1c   : > { %s1254_s14 = scalar_select %p147_p12, %s1144_s0, %s149_s10  }
  0x1d   : > { %p213_p1 = pnand %p982_p11, %p212_p0 }
  0x1e   : > { %s1381_s15 = sand.u32 (!%p213_p1), 1, %s1140_s27   ;;  %p248_p2 = scmp.lt.s32.totalorder (!%p213_p1), %s1148_s28, 1 }
  0x1f   : > { %216 = sbr.rel (%p213_p1) target bundleno = 607 (0x25f), region = 36  ;;  %s1260_s16 = sshll.u32 (!%p213_p1), %s1381_s15, 3 }
  0x20   : > { %s1263_s17 = sshll.u32 (!%p213_p1), %s1148_s28, 3 }
  0x21   : > { %s267_s18 = sld [smem:[#allocation5 + %s1263_s17]] (!%p213_p1) }
  0x26   : > { %s249_s19 = scalar_select %p248_p2, %s1148_s28, 1 }
  0x27   : > { %s268_s12 = scalar_lea.vmem %s1379_s5, %s267_s18 }
  0x28   : > { %s984_s20 = sshll.u32 %s249_s19, 3  ;;  %v286_v0 = vld [vmem:[%s268_s12] sm:$0x1] }
  0x29   : > { %s1270_s23 = scalar_lea.vmem %s1375_s1, %s984_s20  ;;  %s1275_s7 = scalar_lea.vmem %s1376_s2, %s984_s20  ;;  %287 = vst [vmem:[#allocation2] sm:$0x1] %v286_v0 }
  0x2a   : > { %312 = vsyncadd [#allocation3], 16  ;;  %s314_s19 = sadd.s32 1, %s1263_s17 }
  0x2b   : > { %s315_s9 = sld [smem:[#allocation5 + %s314_s19]] }
  0x31   : > { %s316_s22 = scalar_lea.vmem %s1379_s5, %s315_s9 }
  0x32   : > { %v335_v1 = vld [vmem:[%s316_s22] sm:$0x1] }
  0x33   : > { %336 = vst [vmem:[#allocation2 + $0x1] sm:$0x1] %v335_v1 }
  0x34   : > { %361 = vsyncadd [#allocation3], 16  ;;  %s363_s20 = sadd.s32 2, %s1263_s17 }
  0x35   : > { %s364_s24 = sld [smem:[#allocation5 + %s363_s20]] }
  0x3b   : > { %s365_s18 = scalar_lea.vmem %s1379_s5, %s364_s24 }
  0x3c   : > { %v384_v2 = vld [vmem:[%s365_s18] sm:$0x1] }
  0x3d   : > { %385 = vst [vmem:[#allocation2 + $0x2] sm:$0x1] %v384_v2 }
  0x3e   : > { %410 = vsyncadd [#allocation3], 16  ;;  %s412_s10 = sadd.s32 3, %s1263_s17 }
  0x3f   : > { %s413_s12 = sld [smem:[#allocation5 + %s412_s10]] }
  0x45   : > { %s414_s29 = scalar_lea.vmem %s1379_s5, %s413_s12 }
  0x46   : > { %v433_v3 = vld [vmem:[%s414_s29] sm:$0x1] }
  0x47   : > { %434 = vst [vmem:[#allocation2 + $0x3] sm:$0x1] %v433_v3 }
  0x48   : > { %459 = vsyncadd [#allocation3], 16  ;;  %s461_s9 = sadd.s32 4, %s1263_s17 }
  0x49   : > { %s462_s21 = sld [smem:[#allocation5 + %s461_s9]] }
  0x4f   : > { %s463_s24 = scalar_lea.vmem %s1379_s5, %s462_s21 }
  0x50   : > { %v482_v4 = vld [vmem:[%s463_s24] sm:$0x1] }
  0x51   : > { %483 = vst [vmem:[#allocation2 + $0x4] sm:$0x1] %v482_v4 }
  0x52   : > { %508 = vsyncadd [#allocation3], 16  ;;  %s510_s25 = sadd.s32 5, %s1263_s17 }
  0x53   : > { %s511_s8 = sld [smem:[#allocation5 + %s510_s25]] }
  0x59   : > { %s512_s15 = scalar_lea.vmem %s1379_s5, %s511_s8 }
  0x5a   : > { %v531_v5 = vld [vmem:[%s512_s15] sm:$0x1] }
  0x5b   : > { %532 = vst [vmem:[#allocation2 + $0x5] sm:$0x1] %v531_v5 }
  0x5c   : > { %557 = vsyncadd [#allocation3], 16  ;;  %s559_s12 = sadd.s32 6, %s1263_s17 }
  0x5d   : > { %s560_s19 = sld [smem:[#allocation5 + %s559_s12]] }
  0x63   : > { %s561_s21 = scalar_lea.vmem %s1379_s5, %s560_s19 }
  0x64   : > { %v580_v6 = vld [vmem:[%s561_s21] sm:$0x1] }
  0x65   : > { %581 = vst [vmem:[#allocation2 + $0x6] sm:$0x1] %v580_v6 }
  0x66   : > { %606 = vsyncadd [#allocation3], 16  ;;  %s608_s22 = sadd.s32 7, %s1263_s17  ;;  %v656_v8 = vld [vmem:[%s1275_s7] sm:$0xff] }
  0x67   : > { %s609_s20 = sld [smem:[#allocation5 + %s608_s22]] }
  0x6d   : > { %s610_s8 = scalar_lea.vmem %s1379_s5, %s609_s20 }
  0x6e   : > { %v629_v7 = vld [vmem:[%s610_s8] sm:$0x1] }
  0x6f   : > { %630 = vst [vmem:[#allocation2 + $0x7] sm:$0x1] %v629_v7 }
  0x70   : > { %655 = vsyncadd [#allocation3], 16  ;;  %v1159_v9 = vmov 0   ;;  %v1160_v10 = vmov 0.0   ;;  %v665_v11 = vld [vmem:[%s1378_s4] sm:$0xff]  ;;  %vm1161_vm0 = vmmov 0   ;;  %v657_v12 = vlaneseq }
  0x71   : > { %1060 = vset.pattern.permute.xlu0 %v1159_v9  ;;  %996 = vmatprep.subr.mxu0 %v1160_v10  ;;  %vm666_vm1 = vcmask 64512   ;;  %v741_v17 = vld [vmem:[%s1377_s3] sm:$0xff] }
  0x72   : > { %660 = vperm.xlu0 %1060, %v656_v8   ;;  %997 = vmatpush3.msra.mxu0 %v665_v11  ;;  %v658_v13 = vand.u32 127, %v657_v12 }
  0x73   : > { %998 = vmatprep.mubr.msk.f32.mxu0 %vm1161_vm0, %v1160_v10 }
  0xf1   : > { %v661_v14 = vpop.permute.xlu0 %660 }
  0xf2   : > { %vm662_vm2 = vcmp.eq.s32.totalorder %v661_v14, %v658_v13 }
  0xf3   : > { %v987_v15 = vsel %vm662_vm2, 1.0, %v1160_v10 }
  0xf4   : > { %999 = vmatmul.mubr.msk.f32.vlgmr.msra.gmra.mrb[0].mxu0 %vm666_vm1, %v987_v15 }
 0x1c7   : > { %v736_v16 = vpop.f32.mrb[0].mxu0 }
 0x1c8   : > { %v740_v18 = vmul.f32 5.656854, %v736_v16  ;;  %v1000_v19 = vpop.f32.mrb[1].mxu0 }
 0x1ca   : > { %v742_v20 = vadd.f32 %v741_v17, %v740_v18 }
 0x1cb   : > { %1128 = dma.done.wait [#allocation3], 128 }
 0x1cc   : > { %1129 = vsyncadd [#allocation3], 4294967168  ;;  %1061 = vset.pattern.permute.xlu0 %v1159_v9  ;;  %v749_v21 = vld [vmem:[%s1270_s23] sm:$0xff]  ;;  %s990_s15 = sshll.u32 %s1148_s28, 7  ;;  %s1388_s12 = scalar_lea.vmem [#allocation6], %s1260_s16  ;;  %vm757_vm4 = vcmask 261120  }
 0x1cd   : > { %vm750_vm3 = vcmp.ne.s32.totalorder %v749_v21, 1  ;;  %v746_v23 = vld [vmem:[#allocation2] sm:$0xff]  ;;  %s774_s19 = sshll.u32 %s1388_s12, 4  ;;  %s1323_s21 = scalar_lea.hbm %s1380_s6, %s990_s15  ;;  %s1325_s19 = int_to_ptr.vmem [resolvable:$true] %s774_s19 }
 0x1ce   : > { %v751_v22 = vsel %vm750_vm3, 1, %v1159_v9  ;;  %v747_v24 = vmul.f32 5.656854, %v746_v23  ;;  %s1389_s23 = smov %s1388_s12  ;;  %s1390_s22 = sand.u32 1, %s1140_s27  }
 0x1cf   : > { %753 = vperm.xlu0 %1061, %v751_v22   ;;  %s760_s28 = scalar_lea.sflag [#allocation7], %s1390_s22  ;;  %s1074_s20 = scalar_lea.vmem %s1325_s19, 128 }
 0x1d0   : > { %v748_v25 = vadd.f32 %v747_v24, %v742_v20  ;;  %p1075_p3 = scmp.ne.s32.totalorder %s1325_s19, %s1074_s20  ;;  %s1162_s24 = smov [#allocation6]  }
 0x1d1   : > { %s1078_s25 = sshll.u32 %s1162_s24, 4  ;;  %s1079_s25 = int_to_ptr.vmem [resolvable:$false] %s1078_s25 }
 0x1d2   : > { %p1076_p4 = pnand %p1075_p3, %p1241_p9  ;;  %s1080_s8 = scalar_lea.vmem %s1079_s25, 256 }
 0x1d3   : > { %p1081_p6 = scmp.lt.s32.totalorder %s1325_s19, %s1079_s25  ;;  %p1082_p7 = scmp.lt.s32.totalorder %s1080_s8, %s1074_s20 }
 0x1d4   : > { %p1077_p5 = pneg %p1076_p4 }
 0x1d5   : > { %p1083_p8 = por %p1082_p7, %p1081_p6 }
 0x1d7   : > { %p1084_p10 = pnand %p1083_p8, %p1077_p5 }
 0x24e   : > { %v754_v26 = vpop.permute.xlu0 %753 }
 0x24f   : > { %vm755_vm5 = vcmp.eq.s32.totalorder %v754_v26, 1 }
 0x250   : > { %v756_v27 = vsel %vm755_vm5, %v748_v25, 0.0 }
 0x251   : > { %758 = vst.msk [vmem:[%s1389_s23] sm:$0xff] %vm757_vm4, %v756_v27 }
 0x252   : > { %1087 = shalt.err (!%p1084_p10)
}
 0x253   : > { %s1088_s16 = scalar_lea.hbm %s1323_s21, 128  ;;  %s1092_s17 = scalar_lea.hbm %s1380_s6, 256 }
 0x254   : > { %p1089_p11 = scmp.ne.s32.totalorder %s1323_s21, %s1088_s16  ;;  %p1093_p1 = scmp.lt.u32.totalorder %s1323_s21, %s1380_s6 }
 0x255   : > { %p1094_p2 = scmp.lt.u32.totalorder %s1092_s17, %s1088_s16  ;;  %p1096_p4 = scmp.lt.u32.totalorder %s1088_s16, %s1323_s21 }
 0x256   : > { %p1090_p12 = pnand %p1089_p11, %p1241_p9 }
 0x257   : > { %p1095_p3 = por %p1094_p2, %p1093_p1 }
 0x258   : > { %p1091_p0 = pneg %p1090_p12 }
 0x259   : > { %p1097_p5 = por %p1096_p4, %p1095_p3 }
 0x25b   : > { %p1098_p6 = pnand %p1097_p5, %p1091_p0 }
 0x25d   : > { %1101 = shalt.err (!%p1098_p6)
}
 0x25e   : > { %1001 = dma.vmem_to_hbm [thread:$0]  (%p1241_p9), %s1325_s19, 128, %s1323_s21, %s760_s28  }
 0x25f PF: > { %p1007_p7 = scmp.ge.s32.totalorder %s1156_s30, 2  ;;  %s786_s12 = sand.u32 1, %s1136_s26  }
 0x260   : > { %s787_s29 = scalar_lea.sflag [#allocation7], %s786_s12 }
 0x261   : > { %p1004_p8 = pnand %p1007_p7, %p1248_p13 }
 0x263   : > { %1131 = dma.done.wait (!%p1004_p8), %s787_s29, 128  }
 0x264   : > { %1133 = vsyncadd (!%p1004_p8), %s787_s29, 4294967168  ;;  %s25_s30 = sadd.s32 1, %s1156_s30   ;;  %s1391_s28 = sld [smem:[#allocation19_spill]] }
 0x265   : > { %p22_p10 = scmp.ge.s32.totalorder %s25_s30, 4   ;;  %s1392_s29 = sld [smem:[#allocation20_spill]] }
 0x266   : > { %s1393_s26 = smov %s1140_s27  ;;  %s1394_s27 = smov %s1144_s0 }
 0x267   : > { %s1395_s0 = smov %s1254_s14  ;;  %24 = sbr.rel (!%p22_p10) target bundleno = 19 (0x13), region = 412 }
 0x26e   :  { %792 = vsyncpa [#allocation7], 1 }
 0x26f   :  { %794 = vsyncpa [#allocation7 + $0x1], 1 }
 0x270   :  { %795 = vsyncmov [#allocation3] }
 0x273   :  { %s796_s11 = vpop.sfrf %795 }
 0x274   :  { %p993_p9 = scmp.ne.s32.totalorder %s796_s11, 0 }
 0x276   :  { %800 = shalt.err (%p993_p9)  }

</bundles_post_ra>
